<compile_context>
chip_gen: v7x
topology: tpu7x:2x2x1
jax: 0.10.0
libtpu: 0.0.40
codegen_flags: <defaults>
</compile_context>

<pallas_src>
import functools

import jax
import jax.numpy as jnp
from jax.experimental import pallas as pl
from jax.experimental.pallas import tpu as pltpu

_LANE = 128
_VMEM_LIMIT = 48 * 1024 * 1024  # safe on v5e/v6e (128 MiB) and v7x (64 MiB) parts


def _round_up(x, m):
    return (x + m - 1) // m * m


def _pick_tile(n, cap):
    """Largest multiple of 8 that divides n and is <= cap; else n itself (full dim)."""
    if n <= cap:
        return n
    for cand in range(cap - (cap % 8), 7, -8):
        if n % cand == 0:
            return cand
    return n


# ----------------------------------------------------------------------------
# Pallas kernel: fused 4-head Linear + ReLU projection, tiled over rows
# ----------------------------------------------------------------------------
def _proj_relu_kernel(x_ref, w_ref, b_ref, o_ref):
    y = jnp.dot(x_ref[...], w_ref[...], preferred_element_type=jnp.float32)
    o_ref[...] = jnp.maximum(y + b_ref[...], 0.0)


def proj_relu(x, w, b):
    """x: [N, Fin], w: [Fin, Fout], b: [Fout] -> relu(x @ w + b)."""
    n, fin = x.shape
    fout = w.shape[1]
    tile_n = _pick_tile(n, 512)
    b2 = b.reshape(1, fout)
    cost = pl.CostEstimate(
        flops=2 * n * fin * fout,
        transcendentals=0,
        bytes_accessed=4 * (n * fin + fin * fout + fout + n * fout),
    )
    return pl.pallas_call(
        _proj_relu_kernel,
        out_shape=jax.ShapeDtypeStruct((n, fout), jnp.float32),
        grid=(n // tile_n,),
        in_specs=[
            pl.BlockSpec((tile_n, fin), lambda i: (i, 0)),
            pl.BlockSpec((fin, fout), lambda i: (0, 0)),
            pl.BlockSpec((1, fout), lambda i: (0, 0)),
        ],
        out_specs=pl.BlockSpec((tile_n, fout), lambda i: (i, 0)),
        compiler_params=pltpu.CompilerParams(
            dimension_semantics=("parallel",),
            vmem_limit_bytes=_VMEM_LIMIT,
        ),
        cost_estimate=cost,
    )(x, w, b2)


# ----------------------------------------------------------------------------
# Pallas kernel: biaffine scorer  einsum('bxi,ioj,byj->bxyo', [x|1], U, [y|1])
# ----------------------------------------------------------------------------
def _biaffine_kernel(x_ref, u_ref, yt_ref, o_ref):
    # x_ref : (1, tq, P)    padded [x | 1 | 0...] query-row block
    # u_ref : (P, O*P)      zero-padded U flattened so the first contraction is
    #                       a single MXU matmul with a full 128-wide K dim
    # yt_ref: (1, P, T)     padded [y | 1 | 0...]^T, shared by all query tiles
    # o_ref : (1, O, tq, T) lane-dense output block (last dim = T)
    p = yt_ref.shape[1]
    n_out = o_ref.shape[1]
    t_all = jnp.dot(x_ref[0], u_ref[...], preferred_element_type=jnp.float32)  # (tq, O*P)
    yt = yt_ref[0]                                                             # (P, T)
    for o in range(n_out):  # static; out_size is 3 or 4
        o_ref[0, o] = jnp.dot(t_all[:, o * p:(o + 1) * p], yt,
                              preferred_element_type=jnp.float32)


def biaffine_pallas(x, y, U):
    """PyTorch biaffine with bias_x=bias_y=True.

    x, y: [B, T, D]; U: [D+1, out_size, D+1].  Returns [B, T, T, out_size].
    """
    bsz, seq, _ = x.shape
    i1, n_out, j1 = U.shape
    p = _round_up(max(i1, j1), _LANE)

    # bias column + zero padding up to the lane width (removes 9/25-wide K dims)
    ones = jnp.ones((bsz, seq, 1), jnp.float32)
    zx = jnp.zeros((bsz, seq, p - i1), jnp.float32)
    zy = jnp.zeros((bsz, seq, p - j1), jnp.float32)
    xp = jnp.concatenate([x.astype(jnp.float32), ones, zx], axis=-1)   # [B, T, P]
    yp = jnp.concatenate([y.astype(jnp.float32), ones, zy], axis=-1)   # [B, T, P]
    yt = jnp.swapaxes(yp, 1, 2)                                        # [B, P, T]

    # U -> (P, O, P) zero-padded, flattened to (P, O*P): U_flat[i, o*P + j] = U[i, o, j]
    u_pad = jnp.pad(U.astype(jnp.float32), ((0, p - i1), (0, 0), (0, p - j1)))
    u_flat = u_pad.reshape(p, n_out * p)

    tq = _pick_tile(seq, 256)  # keep 2x-buffered O*tq*T f32 blocks small enough for v7x VMEM
    grid = (bsz, seq // tq)

    cost = pl.CostEstimate(
        flops=2 * bsz * seq * p * n_out * p + 2 * bsz * n_out * seq * seq * p,
        transcendentals=0,
        bytes_accessed=4 * (2 * bsz * seq * p + p * n_out * p + bsz * n_out * seq * seq),
    )
    out = pl.pallas_call(
        _biaffine_kernel,
        out_shape=jax.ShapeDtypeStruct((bsz, n_out, seq, seq), jnp.float32),
        grid=grid,
        in_specs=[
            pl.BlockSpec((1, tq, p), lambda b, i: (b, i, 0)),
            pl.BlockSpec((p, n_out * p), lambda b, i: (0, 0)),
            pl.BlockSpec((1, p, seq), lambda b, i: (b, 0, 0)),
        ],
        out_specs=pl.BlockSpec((1, n_out, tq, seq), lambda b, i: (b, 0, i, 0)),
        compiler_params=pltpu.CompilerParams(
            dimension_semantics=("parallel", "parallel"),
            vmem_limit_bytes=_VMEM_LIMIT,
        ),
        cost_estimate=cost,
    )(xp, u_flat, yt)

    # The module contract is 'bxyo' (label dim last).  The kernel's HBM writes stay
    # lane-dense ([B, O, T, T]); the unavoidable permutation that puts the 3/4-wide
    # label dim last is a single XLA copy here rather than O-lane masked stores for
    # the whole T*T slab inside the kernel.
    return jnp.transpose(out, (0, 2, 3, 1))


# ----------------------------------------------------------------------------
# Bidirectional LSTM (pack_padded / pad_packed emulated via length masking)
# ----------------------------------------------------------------------------
def _lstm_direction(x, lens, w_ih, w_hh, b_ih, b_hh, reverse):
    """x: [B, T, Fin], lens: [B] int32. Returns [B, T, H], zeros beyond length."""
    bsz, seq, _ = x.shape
    hid = w_hh.shape[1]

    mask = (jnp.arange(seq)[None, :] < lens[:, None]).astype(jnp.float32)  # [B, T]
    xs = jnp.swapaxes(x, 0, 1)            # [T, B, Fin]
    ms = mask.T[:, :, None]               # [T, B, 1]
    if reverse:
        xs = xs[::-1]
        ms = ms[::-1]

    def step(carry, inp):
        h, c = carry
        x_t, m_t = inp
        gates = x_t @ w_ih.T + h @ w_hh.T + b_ih + b_hh
        i, f, g, o = jnp.split(gates, 4, axis=-1)
        i = jax.nn.sigmoid(i)
        f = jax.nn.sigmoid(f)
        g = jnp.tanh(g)
        o = jax.nn.sigmoid(o)
        c_new = f * c + i * g
        h_new = o * jnp.tanh(c_new)
        h = m_t * h_new + (1.0 - m_t) * h
        c = m_t * c_new + (1.0 - m_t) * c
        out = m_t * h_new
        return (h, c), out

    init = (jnp.zeros((bsz, hid), jnp.float32), jnp.zeros((bsz, hid), jnp.float32))
    _, outs = jax.lax.scan(step, init, (xs, ms))
    if reverse:
        outs = outs[::-1]
    return jnp.swapaxes(outs, 0, 1)       # [B, T, H]


# ----------------------------------------------------------------------------
# Model
# ----------------------------------------------------------------------------
class Config:
    vocab_size = 32
    bert_hidden = 16
    lstm_hidden_size = 8
    to_biaffine_size = 8
    dp_num_label = 3
    ner_num_label = 4


def init_params(key, cfg):
    ks = jax.random.split(key, 16)
    h = cfg.lstm_hidden_size
    d = cfg.to_biaffine_size
    s = 0.1
    p = {
        # synthetic "BERT" embeddings
        "tok_emb": jax.random.normal(ks[0], (cfg.vocab_size, cfg.bert_hidden)) * s,
        "type_emb": jax.random.normal(ks[1], (2, cfg.bert_hidden)) * s,
        # bidirectional LSTM (PyTorch gate order i,f,g,o)
        "lstm_fwd": {
            "w_ih": jax.random.normal(ks[2], (4 * h, cfg.bert_hidden)) * s,
            "w_hh": jax.random.normal(ks[3], (4 * h, h)) * s,
            "b_ih": jax.random.normal(ks[4], (4 * h,)) * s,
            "b_hh": jax.random.normal(ks[5], (4 * h,)) * s,
        },
        "lstm_bwd": {
            "w_ih": jax.random.normal(ks[6], (4 * h, cfg.bert_hidden)) * s,
            "w_hh": jax.random.normal(ks[7], (4 * h, h)) * s,
            "b_ih": jax.random.normal(ks[8], (4 * h,)) * s,
            "b_hh": jax.random.normal(ks[9], (4 * h,)) * s,
        },
        # four projection heads, each Linear(2h -> d) + ReLU; stored [in, out]
        "proj_w": jax.random.normal(ks[10], (2 * h, 4 * d)) * s,
        "proj_b": jax.random.normal(ks[11], (4 * d,)) * s,
        # biaffine tensors
        "U_dp": jax.random.normal(ks[12], (d + 1, cfg.dp_num_label, d + 1)) * s,
        "U_ner": jax.random.normal(ks[13], (3 * d + 1, cfg.ner_num_label, 3 * d + 1)) * s,
    }
    return p


# pure-JAX references (correctness checks for the Pallas hot paths)
def _proj_ref(x, w, b):
    return jnp.maximum(x @ w + b, 0.0)


def _biaffine_ref(x, y, U):
    bsz, seq, _ = x.shape
    ones = jnp.ones((bsz, seq, 1), x.dtype)
    xb = jnp.concatenate([x, ones], axis=-1)
    yb = jnp.concatenate([y, ones], axis=-1)
    return jnp.einsum("bxi,ioj,byj->bxyo", xb, U, yb)


def dadp_forward(params, cfg, input_ids, attention_mask, token_type_ids, use_pallas=True):
    bsz, seq = input_ids.shape
    h = cfg.lstm_hidden_size
    d = cfg.to_biaffine_size

    # TODO(synk): BertModel replaced by a deterministic embedding lookup with the
    # same output layout; a full BERT encoder is out of scope here.
    encoder_rep = params["tok_emb"][input_ids] + params["type_emb"][token_type_ids]

    word_seq_lens = jnp.sum(attention_mask, axis=1).astype(jnp.int32)  # [B]

    # TODO(synk): pack_padded_sequence / pad_packed_sequence emulated by length
    # masking inside lax.scan; the sequential recurrence stays in plain JAX.
    fwd = _lstm_direction(encoder_rep, word_seq_lens, **params["lstm_fwd"], reverse=False)
    bwd = _lstm_direction(encoder_rep, word_seq_lens, **params["lstm_bwd"], reverse=True)
    lstm_out = jnp.concatenate([fwd, bwd], axis=-1)                    # [B, T, 2h]
    assert lstm_out.shape == (bsz, seq, 2 * h)

    # fused 4-head projection + ReLU
    flat = lstm_out.reshape(bsz * seq, 2 * h)
    if use_pallas:
        proj = proj_relu(flat, params["proj_w"], params["proj_b"])
    else:
        proj = _proj_ref(flat, params["proj_w"], params["proj_b"])
    proj = proj.reshape(bsz, seq, 4 * d)
    dp_start_rep = proj[..., 0 * d:1 * d]
    dp_end_rep = proj[..., 1 * d:2 * d]
    ner_start_rep = proj[..., 2 * d:3 * d]
    ner_end_rep = proj[..., 3 * d:4 * d]

    concat_ner_start_rep = jnp.concatenate([ner_start_rep, dp_start_rep, dp_end_rep], axis=2)
    concat_ner_end_rep = jnp.concatenate([ner_end_rep, dp_end_rep, dp_start_rep], axis=2)

    biaff = biaffine_pallas if use_pallas else _biaffine_ref
    dp_span_logits = biaff(dp_start_rep, dp_end_rep, params["U_dp"])
    ner_span_logits = biaff(concat_ner_start_rep, concat_ner_end_rep, params["U_ner"])

    return dp_span_logits, ner_span_logits, dp_start_rep, dp_end_rep


if __name__ == "__main__":
    cfg = Config()
    key = jax.random.PRNGKey(0)
    kp, kid = jax.random.split(key, 2)

    params = init_params(kp, cfg)

    B, T = 2, 8
    input_ids = jax.random.randint(kid, (B, T), 0, cfg.vocab_size, dtype=jnp.int32)
    lengths = jnp.array([T, 5], dtype=jnp.int32)
    attention_mask = (jnp.arange(T)[None, :] < lengths[:, None]).astype(jnp.int32)
    token_type_ids = jnp.zeros((B, T), dtype=jnp.int32)

    fwd_fn = jax.jit(functools.partial(dadp_forward, params, cfg, use_pallas=True))
    ref_fn = jax.jit(functools.partial(dadp_forward, params, cfg, use_pallas=False))

    outs = fwd_fn(input_ids, attention_mask, token_type_ids)
    refs = ref_fn(input_ids, attention_mask, token_type_ids)
    jax.block_until_ready((outs, refs))

    dp_logits, ner_logits, dp_start_rep, dp_end_rep = outs
    assert dp_logits.shape == (B, T, T, cfg.dp_num_label)
    assert ner_logits.shape == (B, T, T, cfg.ner_num_label)
    assert dp_start_rep.shape == (B, T, cfg.to_biaffine_size)
    assert dp_end_rep.shape == (B, T, cfg.to_biaffine_size)

    # numerical sanity check: Pallas path vs pure-JAX reference forward
    for got, want in zip(outs, refs):
        err = float(jnp.max(jnp.abs(got - want)))
        assert jnp.allclose(got, want, atol=1e-4, rtol=1e-3), err

    print("KERNEL_OK")
</pallas_src>

<mosaic_0001>
module attributes {stable_mosaic.version = 11 : i64} {
  func.func @_biaffine_kernel(%arg0: i32, %arg1: i32, %arg2: memref<1x8x128xf32, #tpu.memory_space<vmem>>, %arg3: memref<128x384xf32, #tpu.memory_space<vmem>>, %arg4: memref<1x128x8xf32, #tpu.memory_space<vmem>>, %arg5: memref<1x3x8x8xf32, #tpu.memory_space<vmem>>) attributes {dimension_semantics = [#tpu.dimension_semantics<parallel>, #tpu.dimension_semantics<parallel>], iteration_bounds = array<i64: 2, 1>, scalar_prefetch = 0 : i64, scratch_operands = 0 : i64, tpu.core_type = #tpu.core_type<tc>, window_params = [{transform_indices = @transform_0, window_bounds = array<i64: 1, 8, 128>}, {pipeline_mode = #tpu.pipeline_mode<synchronous>, transform_indices = @transform_1, window_bounds = array<i64: 128, 384>}, {transform_indices = @transform_2, window_bounds = array<i64: 1, 128, 8>}, {transform_indices = @transform_3, window_bounds = array<i64: 1, 3, 8, 8>}]} {
    %c0 = arith.constant 0 : index
    %c0_0 = arith.constant 0 : index
    %c0_1 = arith.constant 0 : index
    %0 = vector.load %arg2[%c0, %c0_0, %c0_1] : memref<1x8x128xf32, #tpu.memory_space<vmem>>, vector<1x8x128xf32>
    %1 = vector.shape_cast %0 : vector<1x8x128xf32> to vector<8x128xf32>
    %c0_2 = arith.constant 0 : index
    %c0_3 = arith.constant 0 : index
    %2 = vector.load %arg3[%c0_2, %c0_3] : memref<128x384xf32, #tpu.memory_space<vmem>>, vector<128x384xf32>
    %cst = arith.constant dense<0.000000e+00> : vector<8x384xf32>
    %3 = tpu.matmul %1, %2, %cst {dimension_numbers = #tpu.dot_dimension_numbers<[1], [0], [0], [1], [0, 0, 1, 1], [], []>} : vector<8x128xf32>, vector<128x384xf32>, vector<8x384xf32> -> vector<8x384xf32>
    %c0_4 = arith.constant 0 : index
    %c0_5 = arith.constant 0 : index
    %c0_6 = arith.constant 0 : index
    %4 = vector.load %arg4[%c0_4, %c0_5, %c0_6] : memref<1x128x8xf32, #tpu.memory_space<vmem>>, vector<1x128x8xf32>
    %5 = vector.shape_cast %4 : vector<1x128x8xf32> to vector<128x8xf32>
    %6 = vector.extract_strided_slice %3 {offsets = [0, 0], sizes = [8, 128], strides = [1, 1]} : vector<8x384xf32> to vector<8x128xf32>
    %cst_7 = arith.constant dense<0.000000e+00> : vector<8x8xf32>
    %7 = tpu.matmul %6, %5, %cst_7 {dimension_numbers = #tpu.dot_dimension_numbers<[1], [0], [0], [1], [0, 0, 1, 1], [], []>} : vector<8x128xf32>, vector<128x8xf32>, vector<8x8xf32> -> vector<8x8xf32>
    %c0_8 = arith.constant 0 : index
    %c0_9 = arith.constant 0 : index
    %c0_10 = arith.constant 0 : index
    %c0_11 = arith.constant 0 : index
    %8 = vector.load %arg5[%c0_8, %c0_9, %c0_10, %c0_11] : memref<1x3x8x8xf32, #tpu.memory_space<vmem>>, vector<1x1x8x8xf32>
    %9 = vector.shape_cast %8 : vector<1x1x8x8xf32> to vector<8x8xf32>
    %10 = vector.shape_cast %7 : vector<8x8xf32> to vector<1x1x8x8xf32>
    tpu.vector_store %arg5[%c0_8, %c0_9, %c0_10, %c0_11], %10 {strides = array<i32>} : memref<1x3x8x8xf32, #tpu.memory_space<vmem>>, vector<1x1x8x8xf32>,
    %11 = vector.extract_strided_slice %3 {offsets = [0, 128], sizes = [8, 128], strides = [1, 1]} : vector<8x384xf32> to vector<8x128xf32>
    %cst_12 = arith.constant dense<0.000000e+00> : vector<8x8xf32>
    %12 = tpu.matmul %11, %5, %cst_12 {dimension_numbers = #tpu.dot_dimension_numbers<[1], [0], [0], [1], [0, 0, 1, 1], [], []>} : vector<8x128xf32>, vector<128x8xf32>, vector<8x8xf32> -> vector<8x8xf32>
    %c0_13 = arith.constant 0 : index
    %c1 = arith.constant 1 : index
    %c0_14 = arith.constant 0 : index
    %c0_15 = arith.constant 0 : index
    %13 = vector.load %arg5[%c0_13, %c1, %c0_14, %c0_15] : memref<1x3x8x8xf32, #tpu.memory_space<vmem>>, vector<1x1x8x8xf32>
    %14 = vector.shape_cast %13 : vector<1x1x8x8xf32> to vector<8x8xf32>
    %15 = vector.shape_cast %12 : vector<8x8xf32> to vector<1x1x8x8xf32>
    tpu.vector_store %arg5[%c0_13, %c1, %c0_14, %c0_15], %15 {strides = array<i32>} : memref<1x3x8x8xf32, #tpu.memory_space<vmem>>, vector<1x1x8x8xf32>,
    %16 = vector.extract_strided_slice %3 {offsets = [0, 256], sizes = [8, 128], strides = [1, 1]} : vector<8x384xf32> to vector<8x128xf32>
    %cst_16 = arith.constant dense<0.000000e+00> : vector<8x8xf32>
    %17 = tpu.matmul %16, %5, %cst_16 {dimension_numbers = #tpu.dot_dimension_numbers<[1], [0], [0], [1], [0, 0, 1, 1], [], []>} : vector<8x128xf32>, vector<128x8xf32>, vector<8x8xf32> -> vector<8x8xf32>
    %c0_17 = arith.constant 0 : index
    %c2 = arith.constant 2 : index
    %c0_18 = arith.constant 0 : index
    %c0_19 = arith.constant 0 : index
    %18 = vector.load %arg5[%c0_17, %c2, %c0_18, %c0_19] : memref<1x3x8x8xf32, #tpu.memory_space<vmem>>, vector<1x1x8x8xf32>
    %19 = vector.shape_cast %18 : vector<1x1x8x8xf32> to vector<8x8xf32>
    %20 = vector.shape_cast %17 : vector<8x8xf32> to vector<1x1x8x8xf32>
    tpu.vector_store %arg5[%c0_17, %c2, %c0_18, %c0_19], %20 {strides = array<i32>} : memref<1x3x8x8xf32, #tpu.memory_space<vmem>>, vector<1x1x8x8xf32>,
    return
  }
  func.func @transform_0(%arg0: i32, %arg1: i32) -> (i32, i32, i32) {
    %c0_i32 = arith.constant 0 : i32
    %c0_i32_0 = arith.constant 0 : i32
    return %arg0, %arg1, %c0_i32 : i32, i32, i32
  }
  func.func @transform_1(%arg0: i32, %arg1: i32) -> (i32, i32) {
    %c0_i32 = arith.constant 0 : i32
    %c0_i32_0 = arith.constant 0 : i32
    %c0_i32_1 = arith.constant 0 : i32
    return %c0_i32, %c0_i32_0 : i32, i32
  }
  func.func @transform_2(%arg0: i32, %arg1: i32) -> (i32, i32, i32) {
    %c0_i32 = arith.constant 0 : i32
    %c0_i32_0 = arith.constant 0 : i32
    %c0_i32_1 = arith.constant 0 : i32
    return %arg0, %c0_i32, %c0_i32_0 : i32, i32, i32
  }
  func.func @transform_3(%arg0: i32, %arg1: i32) -> (i32, i32, i32, i32) {
    %c0_i32 = arith.constant 0 : i32
    %c0_i32_0 = arith.constant 0 : i32
    %c0_i32_1 = arith.constant 0 : i32
    return %arg0, %c0_i32, %arg1, %c0_i32_0 : i32, i32, i32, i32
  }
}

module attributes {stable_mosaic.version = 11 : i64} {
  func.func @_proj_relu_kernel(%arg0: i32, %arg1: memref<16x16xf32, #tpu.memory_space<vmem>>, %arg2: memref<16x32xf32, #tpu.memory_space<vmem>>, %arg3: memref<1x32xf32, #tpu.memory_space<vmem>>, %arg4: memref<16x32xf32, #tpu.memory_space<vmem>>) attributes {dimension_semantics = [#tpu.dimension_semantics<parallel>], iteration_bounds = array<i64: 1>, scalar_prefetch = 0 : i64, scratch_operands = 0 : i64, tpu.core_type = #tpu.core_type<tc>, window_params = [{transform_indices = @transform_0, window_bounds = array<i64: 16, 16>}, {pipeline_mode = #tpu.pipeline_mode<synchronous>, transform_indices = @transform_1, window_bounds = array<i64: 16, 32>}, {pipeline_mode = #tpu.pipeline_mode<synchronous>, transform_indices = @transform_2, window_bounds = array<i64: 1, 32>}, {transform_indices = @transform_3, window_bounds = array<i64: 16, 32>}]} {
    %c0 = arith.constant 0 : index
    %c0_0 = arith.constant 0 : index
    %0 = vector.load %arg1[%c0, %c0_0] : memref<16x16xf32, #tpu.memory_space<vmem>>, vector<16x16xf32>
    %c0_1 = arith.constant 0 : index
    %c0_2 = arith.constant 0 : index
    %1 = vector.load %arg2[%c0_1, %c0_2] : memref<16x32xf32, #tpu.memory_space<vmem>>, vector<16x32xf32>
    %cst = arith.constant dense<0.000000e+00> : vector<16x32xf32>
    %2 = tpu.matmul %0, %1, %cst {dimension_numbers = #tpu.dot_dimension_numbers<[1], [0], [0], [1], [0, 0, 1, 1], [], []>} : vector<16x16xf32>, vector<16x32xf32>, vector<16x32xf32> -> vector<16x32xf32>
    %c0_3 = arith.constant 0 : index
    %c0_4 = arith.constant 0 : index
    %3 = vector.load %arg3[%c0_3, %c0_4] : memref<1x32xf32, #tpu.memory_space<vmem>>, vector<1x32xf32>
    %4 = vector.broadcast %3 : vector<1x32xf32> to vector<16x32xf32>
    %5 = arith.addf %2, %4 : vector<16x32xf32>
    %cst_5 = arith.constant 0.000000e+00 : f32
    %6 = vector.broadcast %cst_5 : f32 to vector<16x32xf32>
    %7 = arith.maximumf %5, %6 : vector<16x32xf32>
    %c0_6 = arith.constant 0 : index
    %c0_7 = arith.constant 0 : index
    %8 = vector.load %arg4[%c0_6, %c0_7] : memref<16x32xf32, #tpu.memory_space<vmem>>, vector<16x32xf32>
    tpu.vector_store %arg4[%c0_6, %c0_7], %7 {strides = array<i32>} : memref<16x32xf32, #tpu.memory_space<vmem>>, vector<16x32xf32>,
    return
  }
  func.func @transform_0(%arg0: i32) -> (i32, i32) {
    %c0_i32 = arith.constant 0 : i32
    %c0_i32_0 = arith.constant 0 : i32
    return %arg0, %c0_i32 : i32, i32
  }
  func.func @transform_1(%arg0: i32) -> (i32, i32) {
    %c0_i32 = arith.constant 0 : i32
    %c0_i32_0 = arith.constant 0 : i32
    %c0_i32_1 = arith.constant 0 : i32
    return %c0_i32, %c0_i32_0 : i32, i32
  }
  func.func @transform_2(%arg0: i32) -> (i32, i32) {
    %c0_i32 = arith.constant 0 : i32
    %c0_i32_0 = arith.constant 0 : i32
    %c0_i32_1 = arith.constant 0 : i32
    return %c0_i32, %c0_i32_0 : i32, i32
  }
  func.func @transform_3(%arg0: i32) -> (i32, i32) {
    %c0_i32 = arith.constant 0 : i32
    %c0_i32_0 = arith.constant 0 : i32
    return %arg0, %c0_i32 : i32, i32
  }
}

module attributes {stable_mosaic.version = 11 : i64} {
  func.func @_biaffine_kernel(%arg0: i32, %arg1: i32, %arg2: memref<1x8x128xf32, #tpu.memory_space<vmem>>, %arg3: memref<128x512xf32, #tpu.memory_space<vmem>>, %arg4: memref<1x128x8xf32, #tpu.memory_space<vmem>>, %arg5: memref<1x4x8x8xf32, #tpu.memory_space<vmem>>) attributes {dimension_semantics = [#tpu.dimension_semantics<parallel>, #tpu.dimension_semantics<parallel>], iteration_bounds = array<i64: 2, 1>, scalar_prefetch = 0 : i64, scratch_operands = 0 : i64, tpu.core_type = #tpu.core_type<tc>, window_params = [{transform_indices = @transform_0, window_bounds = array<i64: 1, 8, 128>}, {pipeline_mode = #tpu.pipeline_mode<synchronous>, transform_indices = @transform_1, window_bounds = array<i64: 128, 512>}, {transform_indices = @transform_2, window_bounds = array<i64: 1, 128, 8>}, {transform_indices = @transform_3, window_bounds = array<i64: 1, 4, 8, 8>}]} {
    %c0 = arith.constant 0 : index
    %c0_0 = arith.constant 0 : index
    %c0_1 = arith.constant 0 : index
    %0 = vector.load %arg2[%c0, %c0_0, %c0_1] : memref<1x8x128xf32, #tpu.memory_space<vmem>>, vector<1x8x128xf32>
    %1 = vector.shape_cast %0 : vector<1x8x128xf32> to vector<8x128xf32>
    %c0_2 = arith.constant 0 : index
    %c0_3 = arith.constant 0 : index
    %2 = vector.load %arg3[%c0_2, %c0_3] : memref<128x512xf32, #tpu.memory_space<vmem>>, vector<128x512xf32>
    %cst = arith.constant dense<0.000000e+00> : vector<8x512xf32>
    %3 = tpu.matmul %1, %2, %cst {dimension_numbers = #tpu.dot_dimension_numbers<[1], [0], [0], [1], [0, 0, 1, 1], [], []>} : vector<8x128xf32>, vector<128x512xf32>, vector<8x512xf32> -> vector<8x512xf32>
    %c0_4 = arith.constant 0 : index
    %c0_5 = arith.constant 0 : index
    %c0_6 = arith.constant 0 : index
    %4 = vector.load %arg4[%c0_4, %c0_5, %c0_6] : memref<1x128x8xf32, #tpu.memory_space<vmem>>, vector<1x128x8xf32>
    %5 = vector.shape_cast %4 : vector<1x128x8xf32> to vector<128x8xf32>
    %6 = vector.extract_strided_slice %3 {offsets = [0, 0], sizes = [8, 128], strides = [1, 1]} : vector<8x512xf32> to vector<8x128xf32>
    %cst_7 = arith.constant dense<0.000000e+00> : vector<8x8xf32>
    %7 = tpu.matmul %6, %5, %cst_7 {dimension_numbers = #tpu.dot_dimension_numbers<[1], [0], [0], [1], [0, 0, 1, 1], [], []>} : vector<8x128xf32>, vector<128x8xf32>, vector<8x8xf32> -> vector<8x8xf32>
    %c0_8 = arith.constant 0 : index
    %c0_9 = arith.constant 0 : index
    %c0_10 = arith.constant 0 : index
    %c0_11 = arith.constant 0 : index
    %8 = vector.load %arg5[%c0_8, %c0_9, %c0_10, %c0_11] : memref<1x4x8x8xf32, #tpu.memory_space<vmem>>, vector<1x1x8x8xf32>
    %9 = vector.shape_cast %8 : vector<1x1x8x8xf32> to vector<8x8xf32>
    %10 = vector.shape_cast %7 : vector<8x8xf32> to vector<1x1x8x8xf32>
    tpu.vector_store %arg5[%c0_8, %c0_9, %c0_10, %c0_11], %10 {strides = array<i32>} : memref<1x4x8x8xf32, #tpu.memory_space<vmem>>, vector<1x1x8x8xf32>,
    %11 = vector.extract_strided_slice %3 {offsets = [0, 128], sizes = [8, 128], strides = [1, 1]} : vector<8x512xf32> to vector<8x128xf32>
    %cst_12 = arith.constant dense<0.000000e+00> : vector<8x8xf32>
    %12 = tpu.matmul %11, %5, %cst_12 {dimension_numbers = #tpu.dot_dimension_numbers<[1], [0], [0], [1], [0, 0, 1, 1], [], []>} : vector<8x128xf32>, vector<128x8xf32>, vector<8x8xf32> -> vector<8x8xf32>
    %c0_13 = arith.constant 0 : index
    %c1 = arith.constant 1 : index
    %c0_14 = arith.constant 0 : index
    %c0_15 = arith.constant 0 : index
    %13 = vector.load %arg5[%c0_13, %c1, %c0_14, %c0_15] : memref<1x4x8x8xf32, #tpu.memory_space<vmem>>, vector<1x1x8x8xf32>
    %14 = vector.shape_cast %13 : vector<1x1x8x8xf32> to vector<8x8xf32>
    %15 = vector.shape_cast %12 : vector<8x8xf32> to vector<1x1x8x8xf32>
    tpu.vector_store %arg5[%c0_13, %c1, %c0_14, %c0_15], %15 {strides = array<i32>} : memref<1x4x8x8xf32, #tpu.memory_space<vmem>>, vector<1x1x8x8xf32>,
    %16 = vector.extract_strided_slice %3 {offsets = [0, 256], sizes = [8, 128], strides = [1, 1]} : vector<8x512xf32> to vector<8x128xf32>
    %cst_16 = arith.constant dense<0.000000e+00> : vector<8x8xf32>
    %17 = tpu.matmul %16, %5, %cst_16 {dimension_numbers = #tpu.dot_dimension_numbers<[1], [0], [0], [1], [0, 0, 1, 1], [], []>} : vector<8x128xf32>, vector<128x8xf32>, vector<8x8xf32> -> vector<8x8xf32>
    %c0_17 = arith.constant 0 : index
    %c2 = arith.constant 2 : index
    %c0_18 = arith.constant 0 : index
    %c0_19 = arith.constant 0 : index
    %18 = vector.load %arg5[%c0_17, %c2, %c0_18, %c0_19] : memref<1x4x8x8xf32, #tpu.memory_space<vmem>>, vector<1x1x8x8xf32>
    %19 = vector.shape_cast %18 : vector<1x1x8x8xf32> to vector<8x8xf32>
    %20 = vector.shape_cast %17 : vector<8x8xf32> to vector<1x1x8x8xf32>
    tpu.vector_store %arg5[%c0_17, %c2, %c0_18, %c0_19], %20 {strides = array<i32>} : memref<1x4x8x8xf32, #tpu.memory_space<vmem>>, vector<1x1x8x8xf32>,
    %21 = vector.extract_strided_slice %3 {offsets = [0, 384], sizes = [8, 128], strides = [1, 1]} : vector<8x512xf32> to vector<8x128xf32>
    %cst_20 = arith.constant dense<0.000000e+00> : vector<8x8xf32>
    %22 = tpu.matmul %21, %5, %cst_20 {dimension_numbers = #tpu.dot_dimension_numbers<[1], [0], [0], [1], [0, 0, 1, 1], [], []>} : vector<8x128xf32>, vector<128x8xf32>, vector<8x8xf32> -> vector<8x8xf32>
    %c0_21 = arith.constant 0 : index
    %c3 = arith.constant 3 : index
    %c0_22 = arith.constant 0 : index
    %c0_23 = arith.constant 0 : index
    %23 = vector.load %arg5[%c0_21, %c3, %c0_22, %c0_23] : memref<1x4x8x8xf32, #tpu.memory_space<vmem>>, vector<1x1x8x8xf32>
    %24 = vector.shape_cast %23 : vector<1x1x8x8xf32> to vector<8x8xf32>
    %25 = vector.shape_cast %22 : vector<8x8xf32> to vector<1x1x8x8xf32>
    tpu.vector_store %arg5[%c0_21, %c3, %c0_22, %c0_23], %25 {strides = array<i32>} : memref<1x4x8x8xf32, #tpu.memory_space<vmem>>, vector<1x1x8x8xf32>,
    return
  }
  func.func @transform_0(%arg0: i32, %arg1: i32) -> (i32, i32, i32) {
    %c0_i32 = arith.constant 0 : i32
    %c0_i32_0 = arith.constant 0 : i32
    return %arg0, %arg1, %c0_i32 : i32, i32, i32
  }
  func.func @transform_1(%arg0: i32, %arg1: i32) -> (i32, i32) {
    %c0_i32 = arith.constant 0 : i32
    %c0_i32_0 = arith.constant 0 : i32
    %c0_i32_1 = arith.constant 0 : i32
    return %c0_i32, %c0_i32_0 : i32, i32
  }
  func.func @transform_2(%arg0: i32, %arg1: i32) -> (i32, i32, i32) {
    %c0_i32 = arith.constant 0 : i32
    %c0_i32_0 = arith.constant 0 : i32
    %c0_i32_1 = arith.constant 0 : i32
    return %arg0, %c0_i32, %c0_i32_0 : i32, i32, i32
  }
  func.func @transform_3(%arg0: i32, %arg1: i32) -> (i32, i32, i32, i32) {
    %c0_i32 = arith.constant 0 : i32
    %c0_i32_0 = arith.constant 0 : i32
    %c0_i32_1 = arith.constant 0 : i32
    return %arg0, %c0_i32, %arg1, %c0_i32_0 : i32, i32, i32, i32
  }
}

</mosaic_0001>

<bundles_post_ra>
// kernel: reverse
= control target key start
LH: loop header
LB: loop body
LE: loop exit
PB: predicated region body
PF: predicated region fallthrough
CT: control target
= control target key end

     0   :  { %v2_v0 = vlaneseq  ;;  %s105_s0 = inlined_call_operand.vmem [shape: f32[8,2], index: 0, kind: input, shape index: {}]   ;;  %s106_s1 = inlined_call_operand.vmem [shape: f32[8,2], index: 1, kind: output, shape index: {}]  }
   0x2   :  { %v3_v1 = vsub.s32 7, %v2_v0 }
   0x4   :  { %4 = vset.pattern.permute.xlu0 %v3_v1 }
   0x5   :  { %v20_v2 = vld [vmem:[%s105_s0] sm:$0x3] }
   0x6   :  { %21 = vst [vmem:[#allocation1] sm:$0x3] %v20_v2 }
   0xd   :  { %v38_v3 = vld [vmem:[#allocation1] sm:$0x3] }
   0xe   :  { %39 = vst [vmem:[#allocation0] sm:$0x3] %v38_v3 }
  0x15   :  { %v40_v4 = vld [vmem:[#allocation0] sm:$0xff] }
  0x16   :  { %41 = vperm.xlu0 %4, %v40_v4  }
  0x95   :  { %v42_v5 = vpop.permute.xlu0 %41 }
  0x96   :  { %43 = vst [vmem:[#allocation2] sm:$0xff] %v42_v5 }
  0x9d   :  { %v47_v6 = vld [vmem:[#allocation2] sm:$0x3] }
  0x9e   :  { %49 = vst [vmem:[#allocation3] sm:$0x3] %v47_v6 }
  0xa5   :  { %v65_v7 = vld [vmem:[#allocation3] sm:$0x3] }
  0xa6   :  { %66 = vst [vmem:[%s106_s1] sm:$0x3] %v65_v7 }

// kernel: custom-call.3
= control target key start
LH: loop header
LB: loop body
LE: loop exit
PB: predicated region body
PF: predicated region fallthrough
CT: control target
= control target key end

     0   :  { %s6_s0 = inlined_call_operand.vmem [shape: f32[2,8], index: 0, kind: output, shape index: {}]  }

// kernel: dadp_forward.3
= control target key start
LH: loop header
LB: loop body
LE: loop exit
PB: predicated region body
PF: predicated region fallthrough
CT: control target
= control target key end

     0   :  { %vm25_vm0 = vcmask 130048   ;;  %vm109_vm1 = vcmask 261120   ;;  %s175_s1 = inlined_call_operand.vmem [shape: f32[16,32], index: 1, kind: input, shape index: {}]   ;;  %s176_s0 = inlined_call_operand.vmem [shape: f32[16,16], index: 0, kind: input, shape index: {}]   ;;  %s177_s2 = inlined_call_operand.vmem [shape: f32[1,32], index: 2, kind: input, shape index: {}]   ;;  %s178_s3 = inlined_call_operand.vmem [shape: f32[16,32], index: 3, kind: output, shape index: {}]  }
   0x1   :  { %v16_v0 = vld [vmem:[%s175_s1] sm:$0xff]  ;;  %v17_v1 = vld [vmem:[%s175_s1 + $0x8] sm:$0xff] }
   0x2   :  { %v14_v2 = vld [vmem:[%s176_s0] sm:$0xff]  ;;  %v130_v3 = vpack.c.bf16 %v17_v1, %v16_v0  ;;  %v15_v4 = vld [vmem:[%s176_s0 + $0x8] sm:$0xff] }
   0x3   :  { %127 = vmatprep.mubr.msk.f32.mxu0 %vm25_vm0, %v14_v2  ;;  %v116_v5 = vld [vmem:[%s177_s2] ss:$0 sm:$0xff] }
   0x4   :  { %131 = vmatprep.subr.bf16.mxu0 %v130_v3 }
   0x5   :  { %133 = vmatpush3.bf16.msra.mxu0 %v130_v3 }
   0x8   :  { %128 = vmatmul.mubr.msk.f32.vlgmr.msra.gmra.mrb[0].mxu0 %vm25_vm0, %v15_v4 }
  0xdb   :  { %v129_v6 = vpop.f32.mrb[0].mxu0 }
  0xdc   :  { %v104_v7 = vadd.f32 %v129_v6, %v116_v5  ;;  %v98_v8 = vpop.f32.mrb[1].mxu0 }
  0xdd   :  { %v99_v9 = vadd.f32 %v116_v5, %v98_v8 }
  0xde   :  { %v108_v10 = vmax.f32 %v104_v7, 0.0 }
  0xdf   :  { %v107_v11 = vmax.f32 %v99_v9, 0.0 }
  0xe0   :  { %111 = vst.msk [vmem:[%s178_s3 + $0x8] sm:$0xff] %vm109_vm1, %v108_v10 }
  0xe1   :  { %110 = vst.msk [vmem:[%s178_s3] sm:$0xff] %vm109_vm1, %v107_v11 }

// kernel: dadp_forward.4
= control target key start
LH: loop header
LB: loop body
LE: loop exit
PB: predicated region body
PF: predicated region fallthrough
CT: control target
= control target key end

     0   :  { %8 = vsyncpa [#allocation3], 0  ;;  %s1586_s0 = inlined_call_operand.vmem [shape: f32[2,8,128], index: 0, kind: input, shape index: {}]   ;;  %s1587_s1 = inlined_call_operand.vmem [shape: f32[128,384], index: 1, kind: input, shape index: {}]   ;;  %s1588_s2 = inlined_call_operand.vmem [shape: f32[2,128,8], index: 2, kind: input, shape index: {}]   ;;  %s1589_s3 = inlined_call_operand.hbm [shape: f32[2,3,8,8], index: 3, kind: output, shape index: {}]  }
   0x1   :  { %10 = vsyncpa [#allocation3 + $0x1], 0  ;;  %s1253_s12 = smov 0   ;;  %s1255_s13 = smov 0  }
   0x2   :  { %s1257_s14 = smov 0   ;;  %s1259_s15 = smov 0  }
   0x3   :  { %s1261_s16 = smov 0   ;;  %s1263_s17 = smov 0  }
   0x4 LB: > { %s735_s18 = sadd.s32 4294967295, %s1225_s17   ;;  %s736_s19 = sadd.s32 4294967294, %s1225_s17   ;;  %s1225_s17 = sphi %s1263_s17, %s16_s17   ;;  %s1221_s16 = sphi %s1261_s16, %s1596_s16   ;;  %s1217_s15 = sphi %s1259_s15, %s1595_s15   ;;  %s1213_s14 = sphi %s1257_s14, %s1594_s14   ;;  %s1209_s13 = sphi %s1255_s13, %s1593_s13   ;;  %s1205_s12 = sphi %s1253_s12, %s1592_s12  }
   0x5   : > { %s28_s20 = sadd.s32 1, %s1221_s16  ;;  %s112_s21 = sadd.s32 1, %s1213_s14 }
   0x6   : > { %p30_p0 = scmp.ge.s32.totalorder %s28_s20, 2  ;;  %p122_p1 = scmp.ne.s32.totalorder %s1213_s14, %s1209_s13 }
   0x7   : > { %p123_p2 = scmp.eq.s32.totalorder %s735_s18, 1  ;;  %p128_p3 = scmp.ne.s32.totalorder %s1209_s13, %s1205_s12 }
   0x8   : > { %s1598_s20 = smov (%p30_p0, %s28_s20), 0  ;;  %p129_p5 = scmp.eq.s32.totalorder %s736_s19, 1 }
   0x9   : > { %p1293_p4 = por %p123_p2, %p122_p1  ;;  %s107_s23 = ssub.s32 %s1221_s16, %s1598_s20 }
   0xa   : > { %p739_p6 = scmp.ge.s32.totalorder %s1225_s17, 1  ;;  %p110_p7 = scmp.eq.s32.totalorder %s107_s23, 0 }
   0xb   : > { %p1300_p8 = por %p129_p5, %p128_p3  ;;  %p168_p9 = scmp.lt.s32.totalorder %s1225_s17, 3 }
   0xc   : > { %s1306_s25 = scalar_select %p110_p7, %s1213_s14, %s112_s21  }
   0xd   : > { %p169_p10 = pnand %p739_p6, %p168_p9 }
   0xe   : > { %v213_v0 = vld [vmem:[%s1587_s1 + $0x8] sm:$0xff] (!%p169_p10)  ;;  %v216_v1 = vld [vmem:[%s1587_s1 + $0x20] sm:$0xff] (!%p169_p10)  ;;  %v215_v4 = vld [vmem:[%s1587_s1 + $0x18] sm:$0xff] (!%p169_p10)  ;;  %v1227_v7 = vmov (!%p169_p10), 0.0|0.0   ;;  %v1228_v8 = vmov (!%p169_p10), 0.0   ;;  %vm1229_vm0 = vmmov (!%p169_p10), 0  }
   0xf   : > { %172 = sbr.rel (%p169_p10) target bundleno = 520 (0x208), region = 32  ;;  %v212_v2 = vld [vmem:[%s1587_s1] sm:$0xff] (!%p169_p10)  ;;  %v957_v3 = vpack.c.bf16 (!%p169_p10), %v216_v1, %v213_v0  ;;  %v219_v5 = vld [vmem:[%s1587_s1 + $0x38] sm:$0xff] (!%p169_p10)  ;;  %v222_v6 = vld [vmem:[%s1587_s1 + $0x50] sm:$0xff] (!%p169_p10)  ;;  %989 = vmatprep.subr.bf16.mxu1 (!%p169_p10), %v1227_v7  ;;  %324 = vmatprep.mubr.f32.mxu0 (!%p169_p10), %v1228_v8  ;;  %p199_p11 = scmp.lt.s32.totalorder (!%p169_p10), %s1217_s15, 1  ;;  %vm487_vm1 = vcmask (!%p169_p10), 64512  }
  0x10   : > { %v959_v9 = vpack.c.bf16 (!%p169_p10), %v215_v4, %v212_v2  ;;  %v961_v10 = vpack.c.bf16 (!%p169_p10), %v222_v6, %v219_v5  ;;  %v218_v11 = vld [vmem:[%s1587_s1 + $0x30] sm:$0xff] (!%p169_p10)  ;;  %v221_v12 = vld [vmem:[%s1587_s1 + $0x48] sm:$0xff] (!%p169_p10)  ;;  %849 = vmatprep.mubr.msk.f32.mxu1 (!%p169_p10), %vm1229_vm0, %v1228_v8  ;;  %v228_v14 = vld [vmem:[%s1587_s1 + $0x80] sm:$0xff] (!%p169_p10)  ;;  %s196_s29 = sand.u32 (!%p169_p10), 1, %s1209_s13   ;;  %s1086_s6 = smul.u32 (!%p169_p10), 384, %s1217_s15 }
  0x11   : > { %v225_v13 = vld [vmem:[%s1587_s1 + $0x68] sm:$0xff] (!%p169_p10)  ;;  %958 = vmatprep.subr.bf16.mxu0 (!%p169_p10), %v957_v3  ;;  %v963_v15 = vpack.c.bf16 (!%p169_p10), %v221_v12, %v218_v11  ;;  %v224_v17 = vld [vmem:[%s1587_s1 + $0x60] sm:$0xff] (!%p169_p10)  ;;  %v227_v18 = vld [vmem:[%s1587_s1 + $0x78] sm:$0xff] (!%p169_p10) }
  0x12   : > { %960 = vmatpush1.bf16.msra.mxu0 (!%p169_p10), %v959_v9  ;;  %v965_v16 = vpack.c.bf16 (!%p169_p10), %v228_v14, %v225_v13  ;;  %v231_v19 = vld [vmem:[%s1587_s1 + $0x98] sm:$0xff] (!%p169_p10)  ;;  %v234_v20 = vld [vmem:[%s1587_s1 + $0xb0] sm:$0xff] (!%p169_p10)  ;;  %v967_v21 = vpack.c.bf16 (!%p169_p10), %v227_v18, %v224_v17  ;;  %v233_v24 = vld [vmem:[%s1587_s1 + $0xa8] sm:$0xff] (!%p169_p10) }
  0x13   : > { %962 = vmatprep.subr.bf16.mxu0 (!%p169_p10), %v961_v10  ;;  %v969_v22 = vpack.c.bf16 (!%p169_p10), %v234_v20, %v231_v19  ;;  %v230_v23 = vld [vmem:[%s1587_s1 + $0x90] sm:$0xff] (!%p169_p10)  ;;  %v237_v25 = vld [vmem:[%s1587_s1 + $0xc8] sm:$0xff] (!%p169_p10)  ;;  %v240_v26 = vld [vmem:[%s1587_s1 + $0xe0] sm:$0xff] (!%p169_p10) }
  0x14   : > { %v214_v27 = vld [vmem:[%s1587_s1 + $0x10] sm:$0xff] (!%p169_p10)  ;;  %v217_v28 = vld [vmem:[%s1587_s1 + $0x28] sm:$0xff] (!%p169_p10)  ;;  %v220_v29 = vld [vmem:[%s1587_s1 + $0x40] sm:$0xff] (!%p169_p10)  ;;  %v971_v30 = vpack.c.bf16 (!%p169_p10), %v233_v24, %v230_v23  ;;  %v973_v33 = vpack.c.bf16 (!%p169_p10), %v240_v26, %v237_v25 }
  0x15   : > { %v990_v31 = vpack.c.bf16 (!%p169_p10), %v217_v28, %v214_v27  ;;  %v223_v32 = vld [vmem:[%s1587_s1 + $0x58] sm:$0xff] (!%p169_p10)  ;;  %v236_v34 = vld [vmem:[%s1587_s1 + $0xc0] sm:$0xff] (!%p169_p10)  ;;  %v246_v37 = vld [vmem:[%s1587_s1 + $0x110] sm:$0xff] (!%p169_p10) }
  0x16   : > { %964 = vmatpush1.bf16.msra.mxu0 %v963_v15  ;;  %v239_v35 = vld [vmem:[%s1587_s1 + $0xd8] sm:$0xff]  ;;  %v993_v38 = vpack.c.bf16 %v223_v32, %v220_v29  ;;  %v226_v39 = vld [vmem:[%s1587_s1 + $0x70] sm:$0xff]  ;;  %v229_v40 = vld [vmem:[%s1587_s1 + $0x88] sm:$0xff]  ;;  %s200_s30 = scalar_select %p199_p11, %s1217_s15, 1 }
  0x17   : > { %966 = vmatprep.subr.bf16.mxu0 %v965_v16  ;;  %v243_v36 = vld [vmem:[%s1587_s1 + $0xf8] sm:$0xff]  ;;  %991 = vmatpush3.bf16.msra.mxu1 %v990_v31  ;;  %v975_v41 = vpack.c.bf16 %v239_v35, %v236_v34  ;;  %v242_v43 = vld [vmem:[%s1587_s1 + $0xf0] sm:$0xff]  ;;  %v245_v44 = vld [vmem:[%s1587_s1 + $0x108] sm:$0xff]  ;;  %v996_v47 = vpack.c.bf16 %v229_v40, %v226_v39  ;;  %s1230_s15 = smov [#allocation2]  }
  0x18   : > { %992 = vmatprep.subr.bf16.mxu1 %v1227_v7  ;;  %v977_v42 = vpack.c.bf16 %v246_v37, %v243_v36  ;;  %v249_v45 = vld [vmem:[%s1587_s1 + $0x128] sm:$0xff]  ;;  %v252_v46 = vld [vmem:[%s1587_s1 + $0x140] sm:$0xff]  ;;  %v235_v49 = vld [vmem:[%s1587_s1 + $0xb8] sm:$0xff]  ;;  %v979_v50 = vpack.c.bf16 %v245_v44, %v242_v43  ;;  %s748_s8 = sshll.u32 %s200_s30, 7  ;;  %s740_s27 = sshll.u32 %s200_s30, 3 }
  0x19   : > { %v232_v48 = vld [vmem:[%s1587_s1 + $0xa0] sm:$0xff]  ;;  %v981_v51 = vpack.c.bf16 %v252_v46, %v249_v45  ;;  %v251_v53 = vld [vmem:[%s1587_s1 + $0x138] sm:$0xff]  ;;  %v258_v55 = vld [vmem:[%s1587_s1 + $0x170] sm:$0xff]  ;;  %s1448_s4 = scalar_lea.vmem %s1588_s2, %s748_s8  ;;  %s205_s10 = scalar_lea.vmem %s1586_s0, %s740_s27 }
  0x1a   : > { %968 = vmatpush1.bf16.msra.mxu0 %v967_v21  ;;  %v248_v52 = vld [vmem:[%s1587_s1 + $0x120] sm:$0xff]  ;;  %v255_v54 = vld [vmem:[%s1587_s1 + $0x158] sm:$0xff]  ;;  %v999_v56 = vpack.c.bf16 %v235_v49, %v232_v48  ;;  %v238_v57 = vld [vmem:[%s1587_s1 + $0xd0] sm:$0xff]  ;;  %s1538_s8 = scalar_lea.hbm %s1589_s3, %s1086_s6  ;;  %s1151_s18 = sshll.u32 %s1230_s15, 4  ;;  %s1152_s18 = int_to_ptr.vmem [resolvable:$false] %s1151_s18 }
  0x1b   : > { %970 = vmatprep.subr.bf16.mxu0 %v969_v22  ;;  %994 = vmatpush3.bf16.msra.mxu1 %v993_v38  ;;  %v241_v58 = vld [vmem:[%s1587_s1 + $0xe8] sm:$0xff]  ;;  %v983_v59 = vpack.c.bf16 %v251_v53, %v248_v52  ;;  %v985_v60 = vpack.c.bf16 %v258_v55, %v255_v54  ;;  %v254_v61 = vld [vmem:[%s1587_s1 + $0x150] sm:$0xff]  ;;  %v244_v0 = vld [vmem:[%s1587_s1 + $0x100] sm:$0xff]  ;;  %s1153_s19 = scalar_lea.vmem %s1152_s18, 768 }
  0x1c   : > { %995 = vmatprep.subr.bf16.mxu1 %v1227_v7  ;;  %v257_v62 = vld [vmem:[%s1587_s1 + $0x168] sm:$0xff]  ;;  %v1002_v63 = vpack.c.bf16 %v241_v58, %v238_v57  ;;  %v247_v1 = vld [vmem:[%s1587_s1 + $0x118] sm:$0xff]  ;;  %v401_v3 = vld [vmem:[%s1448_s4] sm:$0xff] }
  0x1d   : > { %v987_v2 = vpack.c.bf16 %v257_v62, %v254_v61  ;;  %v402_v4 = vld [vmem:[%s1448_s4 + $0x8] sm:$0xff]  ;;  %v1005_v5 = vpack.c.bf16 %v247_v1, %v244_v0  ;;  %v250_v6 = vld [vmem:[%s1587_s1 + $0x130] sm:$0xff]  ;;  %v211_v10 = vld [vmem:[%s205_s10] sm:$0xff]  ;;  %s1540_s10 = scalar_lea.sflag [#allocation3], %s196_s29 }
  0x1e   : > { %972 = vmatpush1.bf16.msra.mxu0 %v971_v30  ;;  %v253_v9 = vld [vmem:[%s1587_s1 + $0x148] sm:$0xff]  ;;  %v1469_v11 = vpack.c.bf16 %v402_v4, %v401_v3  ;;  %v403_v12 = vld [vmem:[%s1448_s4 + $0x10] sm:$0xff]  ;;  %v404_v13 = vld [vmem:[%s1448_s4 + $0x18] sm:$0xff] }
  0x1f   : > { %974 = vmatprep.subr.bf16.mxu0 %v973_v33  ;;  %997 = vmatpush3.bf16.msra.mxu1 %v996_v47  ;;  %v1008_v14 = vpack.c.bf16 %v253_v9, %v250_v6  ;;  %v256_v15 = vld [vmem:[%s1587_s1 + $0x160] sm:$0xff]  ;;  %v259_v16 = vld [vmem:[%s1587_s1 + $0x178] sm:$0xff]  ;;  %v1482_v17 = vpack.c.bf16 %v404_v13, %v403_v12  ;;  %v406_v19 = vld [vmem:[%s1448_s4 + $0x28] sm:$0xff] }
  0x20   : > { %998 = vmatprep.subr.bf16.mxu1 %v1227_v7  ;;  %v405_v18 = vld [vmem:[%s1448_s4 + $0x20] sm:$0xff]  ;;  %v1011_v20 = vpack.c.bf16 %v259_v16, %v256_v15  ;;  %v407_v22 = vld [vmem:[%s1448_s4 + $0x30] sm:$0xff]  ;;  %v408_v23 = vld [vmem:[%s1448_s4 + $0x38] sm:$0xff] }
  0x21   : > { %v1020_v21 = vpack.c.bf16 %v406_v19, %v405_v18  ;;  %v1023_v24 = vpack.c.bf16 %v408_v23, %v407_v22  ;;  %v409_v25 = vld [vmem:[%s1448_s4 + $0x40] sm:$0xff]  ;;  %v410_v26 = vld [vmem:[%s1448_s4 + $0x48] sm:$0xff]  ;;  %v411_v28 = vld [vmem:[%s1448_s4 + $0x50] sm:$0xff] }
  0x22   : > { %976 = vmatpush1.bf16.msra.mxu0 %v975_v41  ;;  %v1026_v27 = vpack.c.bf16 %v410_v26, %v409_v25  ;;  %v412_v29 = vld [vmem:[%s1448_s4 + $0x58] sm:$0xff]  ;;  %v413_v31 = vld [vmem:[%s1448_s4 + $0x60] sm:$0xff]  ;;  %v414_v32 = vld [vmem:[%s1448_s4 + $0x68] sm:$0xff] }
  0x23   : > { %978 = vmatprep.subr.bf16.mxu0 %v977_v42  ;;  %1000 = vmatpush3.bf16.msra.mxu1 %v999_v56  ;;  %v1029_v30 = vpack.c.bf16 %v412_v29, %v411_v28  ;;  %v1032_v33 = vpack.c.bf16 %v414_v32, %v413_v31  ;;  %v415_v34 = vld [vmem:[%s1448_s4 + $0x70] sm:$0xff]  ;;  %v416_v35 = vld [vmem:[%s1448_s4 + $0x78] sm:$0xff]  ;;  %s1085_s4 = smul.u32 24, %s196_s29 }
  0x24   : > { %1001 = vmatprep.subr.bf16.mxu1 %v1227_v7  ;;  %v1035_v36 = vpack.c.bf16 %v416_v35, %v415_v34 }
  0x25   : > { %s198_s5 = scalar_lea.vmem [#allocation2], %s1085_s4 }
  0x26   : > { %980 = vmatpush1.bf16.msra.mxu0 %v979_v50  ;;  %s648_s7 = sshll.u32 %s198_s5, 4  ;;  %s1533_s7 = int_to_ptr.vmem [resolvable:$true] %s648_s7 }
  0x27   : > { %982 = vmatprep.subr.bf16.mxu0 %v981_v51  ;;  %1003 = vmatpush3.bf16.msra.mxu1 %v1002_v63  ;;  %s1147_s11 = scalar_lea.vmem %s1533_s7, 384  ;;  %p1154_p1 = scmp.lt.s32.totalorder %s1533_s7, %s1152_s18 }
  0x28   : > { %1004 = vmatprep.subr.bf16.mxu1 %v1227_v7  ;;  %p1148_p12 = scmp.ne.s32.totalorder %s1533_s7, %s1147_s11  ;;  %p1155_p2 = scmp.lt.s32.totalorder %s1153_s19, %s1147_s11 }
  0x2a   : > { %984 = vmatpush1.bf16.msra.mxu0 %v983_v59  ;;  %p1149_p13 = pnand %p1148_p12, %p1293_p4  ;;  %p1156_p3 = por %p1155_p2, %p1154_p1 }
  0x2b   : > { %986 = vmatprep.subr.bf16.mxu0 %v985_v60  ;;  %1006 = vmatpush3.bf16.msra.mxu1 %v1005_v5 }
  0x2c   : > { %1007 = vmatprep.subr.bf16.mxu1 %v1227_v7  ;;  %p1150_p0 = pneg %p1149_p13 }
  0x2e   : > { %988 = vmatpush1.bf16.msra.mxu0 %v987_v2  ;;  %p1157_p5 = pnand %p1156_p3, %p1150_p0 }
  0x2f   : > { %1013 = vmatprep.subr.bf16.mxu0 %v1227_v7  ;;  %1009 = vmatpush3.bf16.msra.mxu1 %v1008_v14 }
  0x30   : > { %1010 = vmatprep.subr.bf16.mxu1 %v1227_v7 }
  0x31   : > { %325 = vmatmul.mubr.f32.vlgmr.msra.gmra.mrb[0].mxu0 %v211_v10 }
  0x32   : > { %1015 = vmatpush3.bf16.msra.mxu0 %v1469_v11  ;;  %884 = vmatprep.mubr.msk.f32.mxu0 %vm1229_vm0, %v1228_v8 }
  0x33   : > { %1016 = vmatprep.subr.bf16.mxu0 %v1227_v7  ;;  %1012 = vmatpush3.bf16.msra.mxu1 %v1011_v20 }
  0x34   : > { %1037 = vmatprep.subr.bf16.mxu1 %v1227_v7 }
  0x36   : > { %1018 = vmatpush3.bf16.msra.mxu0 %v1482_v17  ;;  %850 = vmatmul.mubr.f32.vlgmr.msra.gmra.mrb[0].mxu1 %v211_v10 }
  0x37   : > { %1019 = vmatprep.subr.bf16.mxu0 %v1227_v7  ;;  %1039 = vmatpush3.bf16.msra.mxu1 %v1469_v11 }
  0x38   : > { %919 = vmatprep.mubr.msk.f32.mxu1 %vm1229_vm0, %v1228_v8  ;;  %1040 = vmatprep.subr.bf16.mxu1 %v1227_v7 }
  0x3a   : > { %1021 = vmatpush3.bf16.msra.mxu0 %v1020_v21 }
  0x3b   : > { %1022 = vmatprep.subr.bf16.mxu0 %v1227_v7  ;;  %1042 = vmatpush3.bf16.msra.mxu1 %v1482_v17 }
  0x3c   : > { %1043 = vmatprep.subr.bf16.mxu1 %v1227_v7 }
  0x3e   : > { %1024 = vmatpush3.bf16.msra.mxu0 %v1023_v24 }
  0x3f   : > { %1025 = vmatprep.subr.bf16.mxu0 %v1227_v7  ;;  %1045 = vmatpush3.bf16.msra.mxu1 %v1020_v21 }
  0x40   : > { %1046 = vmatprep.subr.bf16.mxu1 %v1227_v7 }
  0x42   : > { %1027 = vmatpush3.bf16.msra.mxu0 %v1026_v27 }
  0x43   : > { %1028 = vmatprep.subr.bf16.mxu0 %v1227_v7  ;;  %1048 = vmatpush3.bf16.msra.mxu1 %v1023_v24 }
  0x44   : > { %1049 = vmatprep.subr.bf16.mxu1 %v1227_v7 }
  0x46   : > { %1030 = vmatpush3.bf16.msra.mxu0 %v1029_v30 }
  0x47   : > { %1031 = vmatprep.subr.bf16.mxu0 %v1227_v7  ;;  %1051 = vmatpush3.bf16.msra.mxu1 %v1026_v27 }
  0x48   : > { %1052 = vmatprep.subr.bf16.mxu1 %v1227_v7 }
  0x4a   : > { %1033 = vmatpush3.bf16.msra.mxu0 %v1032_v33 }
  0x4b   : > { %1034 = vmatprep.subr.bf16.mxu0 %v1227_v7  ;;  %1054 = vmatpush3.bf16.msra.mxu1 %v1029_v30 }
  0x4c   : > { %1055 = vmatprep.subr.bf16.mxu1 %v1227_v7 }
  0x4e   : > { %1036 = vmatpush3.bf16.msra.mxu0 %v1035_v36 }
  0x4f   : > { %1061 = vmatprep.subr.bf16.mxu0 %v1227_v7  ;;  %1057 = vmatpush3.bf16.msra.mxu1 %v1032_v33 }
  0x50   : > { %1058 = vmatprep.subr.bf16.mxu1 %v1227_v7 }
  0x53   : > { %1060 = vmatpush3.bf16.msra.mxu1 %v1035_v36 }
 0x104   : > { %v326_v37 = vpop.f32.mrb[0].mxu0 }
 0x105   : > { %v328_v38 = vpop.f32.mrb[1].mxu0  ;;  %885 = vmatmul.mubr.f32.vlgmr.msra.gmra.mrb[2].mxu0 %v326_v37 }
 0x106   : > { %1063 = vmatpush3.bf16.msra.mxu0 %v1469_v11  ;;  %920 = vmatmul.mubr.f32.vlgmr.msra.gmra.mrb[2].mxu1 %v328_v38 }
 0x107   : > { %1064 = vmatprep.subr.bf16.mxu0 %v1227_v7  ;;  %954 = vmatprep.mubr.msk.f32.mxu0 %vm1229_vm0, %v1228_v8 }
 0x109   : > { %v397_v39 = vpop.f32.mrb[0].mxu1 }
 0x10a   : > { %1066 = vmatpush3.bf16.msra.mxu0 %v1482_v17  ;;  %v851_v40 = vpop.f32.mrb[1].mxu1 }
 0x10b   : > { %1067 = vmatprep.subr.bf16.mxu0 %v1227_v7 }
 0x10e   : > { %1069 = vmatpush3.bf16.msra.mxu0 %v1020_v21 }
 0x10f   : > { %1070 = vmatprep.subr.bf16.mxu0 %v1227_v7 }
 0x112   : > { %1072 = vmatpush3.bf16.msra.mxu0 %v1023_v24 }
 0x113   : > { %1073 = vmatprep.subr.bf16.mxu0 %v1227_v7 }
 0x116   : > { %1075 = vmatpush3.bf16.msra.mxu0 %v1026_v27 }
 0x117   : > { %1076 = vmatprep.subr.bf16.mxu0 %v1227_v7 }
 0x11a   : > { %1078 = vmatpush3.bf16.msra.mxu0 %v1029_v30 }
 0x11b   : > { %1079 = vmatprep.subr.bf16.mxu0 %v1227_v7 }
 0x11e   : > { %1081 = vmatpush3.bf16.msra.mxu0 %v1032_v33 }
 0x11f   : > { %1082 = vmatprep.subr.bf16.mxu0 %v1227_v7 }
 0x122   : > { %1084 = vmatpush3.bf16.msra.mxu0 %v1035_v36 }
 0x125   : > { %955 = vmatmul.mubr.f32.vlgmr.msra.gmra.mrb[4].mxu0 %v397_v39 }
 0x1d8   : > { %v483_v8 = vpop.f32.mrb[2].mxu0 }
 0x1d9   : > { %488 = vst.msk [vmem:[%s198_s5] sm:$0xff] %vm487_vm1, %v483_v8  ;;  %v886_v41 = vpop.f32.mrb[3].mxu0  ;;  %v555_v42 = vpop.f32.mrb[2].mxu1 }
 0x1da   : > { %743 = vst.msk [vmem:[%s198_s5 + $0x8] sm:$0xff] %vm487_vm1, %v555_v42  ;;  %v921_v43 = vpop.f32.mrb[3].mxu1 }
 0x1f8   : > { %v627_v7 = vpop.f32.mrb[4].mxu0 }
 0x1f9   : > { %744 = vst.msk [vmem:[%s198_s5 + $0x10] sm:$0xff] %vm487_vm1, %v627_v7  ;;  %v956_v44 = vpop.f32.mrb[5].mxu0 }
 0x1fa   : > { %1160 = shalt.err (!%p1157_p5)
}
 0x1fb   : > { %s1161_s21 = scalar_lea.hbm %s1538_s8, 384  ;;  %s1165_s27 = scalar_lea.hbm %s1589_s3, 768 }
 0x1fc   : > { %p1162_p6 = scmp.ne.s32.totalorder %s1538_s8, %s1161_s21  ;;  %p1166_p10 = scmp.lt.u32.totalorder %s1538_s8, %s1589_s3 }
 0x1fd   : > { %p1167_p11 = scmp.lt.u32.totalorder %s1165_s27, %s1161_s21  ;;  %p1169_p13 = scmp.lt.u32.totalorder %s1161_s21, %s1538_s8 }
 0x1fe   : > { %p1163_p7 = pnand %p1162_p6, %p1293_p4 }
 0x1ff   : > { %p1168_p12 = por %p1167_p11, %p1166_p10 }
 0x200   : > { %p1164_p9 = pneg %p1163_p7 }
 0x201   : > { %p1170_p0 = por %p1169_p13, %p1168_p12 }
 0x203   : > { %p1171_p1 = pnand %p1170_p0, %p1164_p9 }
 0x205   : > { %1174 = shalt.err (!%p1171_p1)
}
 0x206   : > { %s1231_s4 = smov 128   ;;  %s1232_s5 = smov 8  }
 0x207   : > { %1087 = dma.vmem_to_hbm [thread:$0]  (%p1293_p4), %s1533_s7, 384, %s1538_s8, %s1540_s10, %s1231_s4, %s1231_s4, %s1232_s5  }
 0x208 PF: > { %p1093_p2 = scmp.ge.s32.totalorder %s1225_s17, 2  ;;  %s663_s6 = sand.u32 1, %s1205_s12  }
 0x209   : > { %s664_s9 = scalar_lea.sflag [#allocation3], %s663_s6 }
 0x20a   : > { %p1090_p3 = pnand %p1093_p2, %p1300_p8 }
 0x20c   : > { %1200 = dma.done.wait (!%p1090_p3), %s664_s9, 384  }
 0x20d   : > { %1202 = vsyncadd (!%p1090_p3), %s664_s9, 4294966912  ;;  %s16_s17 = sadd.s32 1, %s1225_s17   ;;  %s1592_s12 = smov %s1209_s13 }
 0x20e   : > { %p13_p5 = scmp.ge.s32.totalorder %s16_s17, 4   ;;  %s1593_s13 = smov %s1213_s14 }
 0x20f   : > { %s1594_s14 = smov %s1306_s25  ;;  %s1595_s15 = smov %s1221_s16 }
 0x210   : > { %s1596_s16 = smov %s1598_s20  ;;  %15 = sbr.rel (!%p13_p5) target bundleno = 4 (0x4), region = 72 }
 0x217   :  { %669 = vsyncpa [#allocation3], 1 }
 0x218   :  { %671 = vsyncpa [#allocation3 + $0x1], 1 }

// kernel: dadp_forward.5
= control target key start
LH: loop header
LB: loop body
LE: loop exit
PB: predicated region body
PF: predicated region fallthrough
CT: control target
= control target key end

     0   :  { %s1281_s12 = smov 0   ;;  %s1283_s13 = smov 0   ;;  %s1600_s0 = inlined_call_operand.vmem [shape: f32[2,8,128], index: 0, kind: input, shape index: {}]   ;;  %s1601_s1 = inlined_call_operand.vmem [shape: f32[128,512], index: 1, kind: input, shape index: {}]   ;;  %s1602_s2 = inlined_call_operand.vmem [shape: f32[2,128,8], index: 2, kind: input, shape index: {}]   ;;  %s1603_s3 = inlined_call_operand.vmem [shape: f32[2,4,8,8], index: 3, kind: output, shape index: {}]  }
   0x1   :  { %s1285_s14 = smov 0  }
   0x2 LB: > { %s25_s15 = sadd.s32 1, %s1252_s13  ;;  %p826_p0 = scmp.ge.s32.totalorder %s1256_s14, 1  ;;  %s1256_s14 = sphi %s1285_s14, %s13_s14   ;;  %s1252_s13 = sphi %s1283_s13, %s1605_s13   ;;  %s1248_s12 = sphi %s1281_s12, %s1604_s12  }
   0x3   : > { %p27_p1 = scmp.ge.s32.totalorder %s25_s15, 2  ;;  %p165_p2 = scmp.lt.s32.totalorder %s1256_s14, 3 }
   0x5   : > { %s1607_s15 = smov (%p27_p1, %s25_s15), 0  ;;  %p166_p3 = pnand %p826_p0, %p165_p2 }
   0x6   : > { %v221_v0 = vld [vmem:[%s1601_s1 + $0x8] sm:$0xff] (!%p166_p3)  ;;  %v220_v2 = vld [vmem:[%s1601_s1] sm:$0xff] (!%p166_p3)  ;;  %v1258_v7 = vmov (!%p166_p3), 0.0   ;;  %v223_v26 = vld [vmem:[%s1601_s1 + $0x18] sm:$0xff] (!%p166_p3)  ;;  %p199_p4 = scmp.lt.s32.totalorder (!%p166_p3), %s1248_s12, 1  ;;  %vm1260_vm0 = vmmov (!%p166_p3), 0  }
   0x7   : > { %169 = sbr.rel (%p166_p3) target bundleno = 500 (0x1f4), region = 32  ;;  %v225_v1 = vld [vmem:[%s1601_s1 + $0x28] sm:$0xff] (!%p166_p3)  ;;  %v224_v4 = vld [vmem:[%s1601_s1 + $0x20] sm:$0xff] (!%p166_p3)  ;;  %348 = vmatprep.mubr.f32.mxu0 (!%p166_p3), %v1258_v7  ;;  %419 = vmatprep.mubr.f32.mxu1 (!%p166_p3), %v1258_v7  ;;  %v227_v28 = vld [vmem:[%s1601_s1 + $0x38] sm:$0xff] (!%p166_p3)  ;;  %vm512_vm1 = vcmask (!%p166_p3), 64512  }
   0x8   : > { %v1047_v3 = vpack.c.bf16 (!%p166_p3), %v225_v1, %v221_v0  ;;  %v229_v5 = vld [vmem:[%s1601_s1 + $0x48] sm:$0xff] (!%p166_p3)  ;;  %v1049_v8 = vpack.c.bf16 (!%p166_p3), %v224_v4, %v220_v2  ;;  %v228_v10 = vld [vmem:[%s1601_s1 + $0x40] sm:$0xff] (!%p166_p3)  ;;  %v222_v29 = vld [vmem:[%s1601_s1 + $0x10] sm:$0xff] (!%p166_p3)  ;;  %v1079_v33 = vpack.c.bf16 (!%p166_p3), %v227_v28, %v223_v26 }
   0x9   : > { %v233_v6 = vld [vmem:[%s1601_s1 + $0x68] sm:$0xff] (!%p166_p3)  ;;  %v232_v11 = vld [vmem:[%s1601_s1 + $0x60] sm:$0xff] (!%p166_p3)  ;;  %v226_v30 = vld [vmem:[%s1601_s1 + $0x30] sm:$0xff] (!%p166_p3) }
   0xa   : > { %v1051_v9 = vpack.c.bf16 (!%p166_p3), %v233_v6, %v229_v5  ;;  %v237_v12 = vld [vmem:[%s1601_s1 + $0x88] sm:$0xff] (!%p166_p3)  ;;  %1048 = vmatprep.subr.bf16.mxu0 (!%p166_p3), %v1047_v3  ;;  %v1053_v14 = vpack.c.bf16 (!%p166_p3), %v232_v11, %v228_v10  ;;  %v236_v16 = vld [vmem:[%s1601_s1 + $0x80] sm:$0xff] (!%p166_p3)  ;;  %v1081_v34 = vpack.c.bf16 (!%p166_p3), %v226_v30, %v222_v29  ;;  %v231_v35 = vld [vmem:[%s1601_s1 + $0x58] sm:$0xff] (!%p166_p3)  ;;  %1080 = vmatprep.subr.bf16.mxu1 (!%p166_p3), %v1079_v33  ;;  %v1259_v33 = vmov (!%p166_p3), 0.0|0.0  }
   0xb   : > { %v241_v13 = vld [vmem:[%s1601_s1 + $0xa8] sm:$0xff] (!%p166_p3)  ;;  %1050 = vmatpush1.bf16.msra.mxu0 (!%p166_p3), %v1049_v8  ;;  %v240_v17 = vld [vmem:[%s1601_s1 + $0xa0] sm:$0xff] (!%p166_p3)  ;;  %v235_v36 = vld [vmem:[%s1601_s1 + $0x78] sm:$0xff] (!%p166_p3) }
   0xc   : > { %1052 = vmatprep.subr.bf16.mxu0 (!%p166_p3), %v1051_v9  ;;  %v1055_v15 = vpack.c.bf16 (!%p166_p3), %v241_v13, %v237_v12  ;;  %v245_v18 = vld [vmem:[%s1601_s1 + $0xc8] sm:$0xff] (!%p166_p3)  ;;  %v1057_v20 = vpack.c.bf16 (!%p166_p3), %v240_v17, %v236_v16  ;;  %v244_v22 = vld [vmem:[%s1601_s1 + $0xc0] sm:$0xff] (!%p166_p3)  ;;  %v1083_v38 = vpack.c.bf16 (!%p166_p3), %v235_v36, %v231_v35  ;;  %v230_v39 = vld [vmem:[%s1601_s1 + $0x50] sm:$0xff] (!%p166_p3)  ;;  %1082 = vmatpush1.bf16.msra.mxu1 (!%p166_p3), %v1081_v34 }
   0xd   : > { %v249_v19 = vld [vmem:[%s1601_s1 + $0xe8] sm:$0xff] (!%p166_p3)  ;;  %v248_v23 = vld [vmem:[%s1601_s1 + $0xe0] sm:$0xff] (!%p166_p3)  ;;  %v234_v40 = vld [vmem:[%s1601_s1 + $0x70] sm:$0xff] (!%p166_p3) }
   0xe   : > { %v1059_v21 = vpack.c.bf16 %v249_v19, %v245_v18  ;;  %v253_v24 = vld [vmem:[%s1601_s1 + $0x108] sm:$0xff]  ;;  %v252_v27 = vld [vmem:[%s1601_s1 + $0x100] sm:$0xff]  ;;  %v1061_v31 = vpack.c.bf16 %v248_v23, %v244_v22  ;;  %v239_v41 = vld [vmem:[%s1601_s1 + $0x98] sm:$0xff]  ;;  %v1085_v45 = vpack.c.bf16 %v234_v40, %v230_v39  ;;  %1084 = vmatprep.subr.bf16.mxu1 %v1083_v38  ;;  %s1609_s12 = smov (!%p199_p4, %s1248_s12), 1 }
   0xf   : > { %1054 = vmatpush1.bf16.msra.mxu0 %v1053_v14  ;;  %v257_v25 = vld [vmem:[%s1601_s1 + $0x128] sm:$0xff]  ;;  %v256_v32 = vld [vmem:[%s1601_s1 + $0x120] sm:$0xff]  ;;  %v243_v44 = vld [vmem:[%s1601_s1 + $0xb8] sm:$0xff]  ;;  %s837_s20 = sshll.u32 %s1609_s12, 7  ;;  %s827_s29 = sshll.u32 %s1609_s12, 3 }
  0x10   : > { %1056 = vmatprep.subr.bf16.mxu0 %v1055_v15  ;;  %v1063_v37 = vpack.c.bf16 %v257_v25, %v253_v24  ;;  %v261_v42 = vld [vmem:[%s1601_s1 + $0x148] sm:$0xff]  ;;  %v1065_v46 = vpack.c.bf16 %v256_v32, %v252_v27  ;;  %v260_v47 = vld [vmem:[%s1601_s1 + $0x140] sm:$0xff]  ;;  %v1087_v48 = vpack.c.bf16 %v243_v44, %v239_v41  ;;  %v238_v49 = vld [vmem:[%s1601_s1 + $0x90] sm:$0xff]  ;;  %1086 = vmatpush1.bf16.msra.mxu1 %v1085_v45  ;;  %s1476_s9 = scalar_lea.vmem %s1602_s2, %s837_s20  ;;  %s205_s16 = scalar_lea.vmem %s1600_s0, %s827_s29 }
  0x11   : > { %v265_v43 = vld [vmem:[%s1601_s1 + $0x168] sm:$0xff]  ;;  %v242_v50 = vld [vmem:[%s1601_s1 + $0xb0] sm:$0xff]  ;;  %v264_v52 = vld [vmem:[%s1601_s1 + $0x160] sm:$0xff] }
  0x12   : > { %v1067_v51 = vpack.c.bf16 %v265_v43, %v261_v42  ;;  %v247_v53 = vld [vmem:[%s1601_s1 + $0xd8] sm:$0xff]  ;;  %v269_v55 = vld [vmem:[%s1601_s1 + $0x188] sm:$0xff]  ;;  %v1089_v57 = vpack.c.bf16 %v242_v50, %v238_v49  ;;  %v1069_v58 = vpack.c.bf16 %v264_v52, %v260_v47  ;;  %v268_v59 = vld [vmem:[%s1601_s1 + $0x180] sm:$0xff]  ;;  %1088 = vmatprep.subr.bf16.mxu1 %v1087_v48 }
  0x13   : > { %1058 = vmatpush1.bf16.msra.mxu0 %v1057_v20  ;;  %v251_v54 = vld [vmem:[%s1601_s1 + $0xf8] sm:$0xff]  ;;  %v273_v56 = vld [vmem:[%s1601_s1 + $0x1a8] sm:$0xff]  ;;  %v246_v61 = vld [vmem:[%s1601_s1 + $0xd0] sm:$0xff] }
  0x14   : > { %1060 = vmatprep.subr.bf16.mxu0 %v1059_v21  ;;  %v1091_v60 = vpack.c.bf16 %v251_v54, %v247_v53  ;;  %v250_v62 = vld [vmem:[%s1601_s1 + $0xf0] sm:$0xff]  ;;  %v1071_v63 = vpack.c.bf16 %v273_v56, %v269_v55  ;;  %v272_v0 = vld [vmem:[%s1601_s1 + $0x1a0] sm:$0xff]  ;;  %v255_v1 = vld [vmem:[%s1601_s1 + $0x118] sm:$0xff]  ;;  %1090 = vmatpush1.bf16.msra.mxu1 %v1089_v57 }
  0x15   : > { %v259_v2 = vld [vmem:[%s1601_s1 + $0x138] sm:$0xff]  ;;  %v277_v3 = vld [vmem:[%s1601_s1 + $0x1c8] sm:$0xff]  ;;  %v1093_v5 = vpack.c.bf16 %v250_v62, %v246_v61  ;;  %v1073_v6 = vpack.c.bf16 %v272_v0, %v268_v59  ;;  %v276_v8 = vld [vmem:[%s1601_s1 + $0x1c0] sm:$0xff] }
  0x16   : > { %v281_v4 = vld [vmem:[%s1601_s1 + $0x1e8] sm:$0xff]  ;;  %1092 = vmatprep.subr.bf16.mxu1 %v1091_v60  ;;  %v1095_v9 = vpack.c.bf16 %v259_v2, %v255_v1  ;;  %v254_v10 = vld [vmem:[%s1601_s1 + $0x110] sm:$0xff]  ;;  %v280_v13 = vld [vmem:[%s1601_s1 + $0x1e0] sm:$0xff] }
  0x17   : > { %1062 = vmatpush1.bf16.msra.mxu0 %v1061_v31  ;;  %v258_v11 = vld [vmem:[%s1601_s1 + $0x130] sm:$0xff]  ;;  %v1075_v12 = vpack.c.bf16 %v281_v4, %v277_v3  ;;  %v263_v14 = vld [vmem:[%s1601_s1 + $0x158] sm:$0xff]  ;;  %v1077_v17 = vpack.c.bf16 %v280_v13, %v276_v8  ;;  %v426_v23 = vld [vmem:[%s1476_s9] sm:$0xff] }
  0x18   : > { %1064 = vmatprep.subr.bf16.mxu0 %v1063_v37  ;;  %v267_v15 = vld [vmem:[%s1601_s1 + $0x178] sm:$0xff]  ;;  %1094 = vmatpush1.bf16.msra.mxu1 %v1093_v5  ;;  %v1097_v16 = vpack.c.bf16 %v258_v11, %v254_v10  ;;  %v262_v19 = vld [vmem:[%s1601_s1 + $0x150] sm:$0xff]  ;;  %v427_v24 = vld [vmem:[%s1476_s9 + $0x8] sm:$0xff] }
  0x19   : > { %1096 = vmatprep.subr.bf16.mxu1 %v1095_v9  ;;  %v1099_v18 = vpack.c.bf16 %v267_v15, %v263_v14  ;;  %v266_v20 = vld [vmem:[%s1601_s1 + $0x170] sm:$0xff]  ;;  %v271_v21 = vld [vmem:[%s1601_s1 + $0x198] sm:$0xff]  ;;  %v219_v25 = vld [vmem:[%s205_s16] sm:$0xff]  ;;  %v1504_v31 = vpack.c.bf16 %v427_v24, %v426_v23 }
  0x1a   : > { %v275_v22 = vld [vmem:[%s1601_s1 + $0x1b8] sm:$0xff]  ;;  %v1101_v26 = vpack.c.bf16 %v266_v20, %v262_v19  ;;  %v270_v28 = vld [vmem:[%s1601_s1 + $0x190] sm:$0xff]  ;;  %v430_v41 = vld [vmem:[%s1476_s9 + $0x20] sm:$0xff] }
  0x1b   : > { %1066 = vmatpush1.bf16.msra.mxu0 %v1065_v46  ;;  %v1103_v27 = vpack.c.bf16 %v275_v22, %v271_v21  ;;  %v274_v29 = vld [vmem:[%s1601_s1 + $0x1b0] sm:$0xff]  ;;  %v279_v30 = vld [vmem:[%s1601_s1 + $0x1d8] sm:$0xff]  ;;  %v431_v42 = vld [vmem:[%s1476_s9 + $0x28] sm:$0xff] }
  0x1c   : > { %1068 = vmatprep.subr.bf16.mxu0 %v1067_v51  ;;  %1098 = vmatpush1.bf16.msra.mxu1 %v1097_v16  ;;  %v283_v32 = vld [vmem:[%s1601_s1 + $0x1f8] sm:$0xff]  ;;  %v428_v34 = vld [vmem:[%s1476_s9 + $0x10] sm:$0xff]  ;;  %v1105_v36 = vpack.c.bf16 %v274_v29, %v270_v28  ;;  %v1525_v44 = vpack.c.bf16 %v431_v42, %v430_v41  ;;  %v434_v48 = vld [vmem:[%s1476_s9 + $0x40] sm:$0xff] }
  0x1d   : > { %1100 = vmatprep.subr.bf16.mxu1 %v1099_v18  ;;  %v429_v35 = vld [vmem:[%s1476_s9 + $0x18] sm:$0xff]  ;;  %v1107_v37 = vpack.c.bf16 %v283_v32, %v279_v30  ;;  %v278_v38 = vld [vmem:[%s1601_s1 + $0x1d0] sm:$0xff]  ;;  %v435_v49 = vld [vmem:[%s1476_s9 + $0x48] sm:$0xff] }
  0x1e   : > { %v282_v39 = vld [vmem:[%s1601_s1 + $0x1f0] sm:$0xff]  ;;  %v1519_v40 = vpack.c.bf16 %v429_v35, %v428_v34  ;;  %v433_v46 = vld [vmem:[%s1476_s9 + $0x38] sm:$0xff]  ;;  %v1124_v50 = vpack.c.bf16 %v435_v49, %v434_v48  ;;  %v438_v54 = vld [vmem:[%s1476_s9 + $0x60] sm:$0xff] }
  0x1f   : > { %1070 = vmatpush1.bf16.msra.mxu0 %v1069_v58  ;;  %v1109_v43 = vpack.c.bf16 %v282_v39, %v278_v38  ;;  %v432_v45 = vld [vmem:[%s1476_s9 + $0x30] sm:$0xff]  ;;  %v437_v52 = vld [vmem:[%s1476_s9 + $0x58] sm:$0xff]  ;;  %v439_v55 = vld [vmem:[%s1476_s9 + $0x68] sm:$0xff] }
  0x20   : > { %1072 = vmatprep.subr.bf16.mxu0 %v1071_v63  ;;  %1102 = vmatpush1.bf16.msra.mxu1 %v1101_v26  ;;  %v1532_v47 = vpack.c.bf16 %v433_v46, %v432_v45  ;;  %v436_v51 = vld [vmem:[%s1476_s9 + $0x50] sm:$0xff]  ;;  %v1130_v56 = vpack.c.bf16 %v439_v55, %v438_v54  ;;  %v441_v58 = vld [vmem:[%s1476_s9 + $0x78] sm:$0xff] }
  0x21   : > { %1104 = vmatprep.subr.bf16.mxu1 %v1103_v27  ;;  %v1127_v53 = vpack.c.bf16 %v437_v52, %v436_v51  ;;  %v440_v57 = vld [vmem:[%s1476_s9 + $0x70] sm:$0xff]  ;;  %s838_s9 = sshll.u32 %s1609_s12, 5 }
  0x22   : > { %v1133_v59 = vpack.c.bf16 %v441_v58, %v440_v57  ;;  %s218_s17 = scalar_lea.vmem %s1603_s3, %s838_s9 }
  0x23   : > { %1074 = vmatpush1.bf16.msra.mxu0 %v1073_v6 }
  0x24   : > { %1076 = vmatprep.subr.bf16.mxu0 %v1075_v12  ;;  %1106 = vmatpush1.bf16.msra.mxu1 %v1105_v36 }
  0x25   : > { %1108 = vmatprep.subr.bf16.mxu1 %v1107_v37 }
  0x27   : > { %1078 = vmatpush1.bf16.msra.mxu0 %v1077_v17 }
  0x28   : > { %1111 = vmatprep.subr.bf16.mxu0 %v1259_v33  ;;  %1110 = vmatpush1.bf16.msra.mxu1 %v1109_v43 }
  0x29   : > { %1135 = vmatprep.subr.bf16.mxu1 %v1259_v33 }
  0x2a   : > { %349 = vmatmul.mubr.f32.vlgmr.msra.gmra.mrb[0].mxu0 %v219_v25 }
  0x2b   : > { %1113 = vmatpush3.bf16.msra.mxu0 %v1504_v31  ;;  %420 = vmatmul.mubr.f32.vlgmr.msra.gmra.mrb[0].mxu1 %v219_v25 }
  0x2c   : > { %1114 = vmatprep.subr.bf16.mxu0 %v1259_v33  ;;  %1137 = vmatpush3.bf16.msra.mxu1 %v1504_v31 }
  0x2d   : > { %1138 = vmatprep.subr.bf16.mxu1 %v1259_v33  ;;  %939 = vmatprep.mubr.msk.f32.mxu0 %vm1260_vm0, %v1258_v7 }
  0x2e   : > { %974 = vmatprep.mubr.msk.f32.mxu1 %vm1260_vm0, %v1258_v7 }
  0x2f   : > { %1116 = vmatpush3.bf16.msra.mxu0 %v1519_v40 }
  0x30   : > { %1117 = vmatprep.subr.bf16.mxu0 %v1259_v33  ;;  %1140 = vmatpush3.bf16.msra.mxu1 %v1519_v40 }
  0x31   : > { %1141 = vmatprep.subr.bf16.mxu1 %v1259_v33 }
  0x33   : > { %1119 = vmatpush3.bf16.msra.mxu0 %v1525_v44 }
  0x34   : > { %1120 = vmatprep.subr.bf16.mxu0 %v1259_v33  ;;  %1143 = vmatpush3.bf16.msra.mxu1 %v1525_v44 }
  0x35   : > { %1144 = vmatprep.subr.bf16.mxu1 %v1259_v33 }
  0x37   : > { %1122 = vmatpush3.bf16.msra.mxu0 %v1532_v47 }
  0x38   : > { %1123 = vmatprep.subr.bf16.mxu0 %v1259_v33  ;;  %1146 = vmatpush3.bf16.msra.mxu1 %v1532_v47 }
  0x39   : > { %1147 = vmatprep.subr.bf16.mxu1 %v1259_v33 }
  0x3b   : > { %1125 = vmatpush3.bf16.msra.mxu0 %v1124_v50 }
  0x3c   : > { %1126 = vmatprep.subr.bf16.mxu0 %v1259_v33  ;;  %1149 = vmatpush3.bf16.msra.mxu1 %v1124_v50 }
  0x3d   : > { %1150 = vmatprep.subr.bf16.mxu1 %v1259_v33 }
  0x3f   : > { %1128 = vmatpush3.bf16.msra.mxu0 %v1127_v53 }
  0x40   : > { %1129 = vmatprep.subr.bf16.mxu0 %v1259_v33  ;;  %1152 = vmatpush3.bf16.msra.mxu1 %v1127_v53 }
  0x41   : > { %1153 = vmatprep.subr.bf16.mxu1 %v1259_v33 }
  0x43   : > { %1131 = vmatpush3.bf16.msra.mxu0 %v1130_v56 }
  0x44   : > { %1132 = vmatprep.subr.bf16.mxu0 %v1259_v33  ;;  %1155 = vmatpush3.bf16.msra.mxu1 %v1130_v56 }
  0x45   : > { %1156 = vmatprep.subr.bf16.mxu1 %v1259_v33 }
  0x47   : > { %1134 = vmatpush3.bf16.msra.mxu0 %v1133_v59 }
  0x48   : > { %1159 = vmatprep.subr.bf16.mxu0 %v1259_v33  ;;  %1158 = vmatpush3.bf16.msra.mxu1 %v1133_v59 }
  0x49   : > { %1183 = vmatprep.subr.bf16.mxu1 %v1259_v33 }
  0xfd   : > { %v350_v60 = vpop.f32.mrb[0].mxu0 }
  0xfe   : > { %v352_v61 = vpop.f32.mrb[1].mxu0  ;;  %940 = vmatmul.mubr.f32.vlgmr.msra.gmra.mrb[2].mxu0 %v350_v60  ;;  %v421_v62 = vpop.f32.mrb[0].mxu1 }
  0xff   : > { %1161 = vmatpush3.bf16.msra.mxu0 %v1504_v31  ;;  %975 = vmatmul.mubr.f32.vlgmr.msra.gmra.mrb[2].mxu1 %v352_v61  ;;  %v423_v63 = vpop.f32.mrb[1].mxu1 }
 0x100   : > { %1185 = vmatpush3.bf16.msra.mxu1 %v1504_v31  ;;  %1162 = vmatprep.subr.bf16.mxu0 %v1259_v33 }
 0x101   : > { %1186 = vmatprep.subr.bf16.mxu1 %v1259_v33  ;;  %1009 = vmatprep.mubr.msk.f32.mxu0 %vm1260_vm0, %v1258_v7 }
 0x102   : > { %1044 = vmatprep.mubr.msk.f32.mxu1 %vm1260_vm0, %v1258_v7 }
 0x103   : > { %1164 = vmatpush3.bf16.msra.mxu0 %v1519_v40 }
 0x104   : > { %1188 = vmatpush3.bf16.msra.mxu1 %v1519_v40  ;;  %1165 = vmatprep.subr.bf16.mxu0 %v1259_v33 }
 0x105   : > { %1189 = vmatprep.subr.bf16.mxu1 %v1259_v33 }
 0x107   : > { %1167 = vmatpush3.bf16.msra.mxu0 %v1525_v44 }
 0x108   : > { %1191 = vmatpush3.bf16.msra.mxu1 %v1525_v44  ;;  %1168 = vmatprep.subr.bf16.mxu0 %v1259_v33 }
 0x109   : > { %1192 = vmatprep.subr.bf16.mxu1 %v1259_v33 }
 0x10b   : > { %1170 = vmatpush3.bf16.msra.mxu0 %v1532_v47 }
 0x10c   : > { %1194 = vmatpush3.bf16.msra.mxu1 %v1532_v47  ;;  %1171 = vmatprep.subr.bf16.mxu0 %v1259_v33 }
 0x10d   : > { %1195 = vmatprep.subr.bf16.mxu1 %v1259_v33 }
 0x10f   : > { %1173 = vmatpush3.bf16.msra.mxu0 %v1124_v50 }
 0x110   : > { %1197 = vmatpush3.bf16.msra.mxu1 %v1124_v50  ;;  %1174 = vmatprep.subr.bf16.mxu0 %v1259_v33 }
 0x111   : > { %1198 = vmatprep.subr.bf16.mxu1 %v1259_v33 }
 0x113   : > { %1176 = vmatpush3.bf16.msra.mxu0 %v1127_v53 }
 0x114   : > { %1200 = vmatpush3.bf16.msra.mxu1 %v1127_v53  ;;  %1177 = vmatprep.subr.bf16.mxu0 %v1259_v33 }
 0x115   : > { %1201 = vmatprep.subr.bf16.mxu1 %v1259_v33 }
 0x117   : > { %1179 = vmatpush3.bf16.msra.mxu0 %v1130_v56 }
 0x118   : > { %1203 = vmatpush3.bf16.msra.mxu1 %v1130_v56  ;;  %1180 = vmatprep.subr.bf16.mxu0 %v1259_v33 }
 0x119   : > { %1204 = vmatprep.subr.bf16.mxu1 %v1259_v33 }
 0x11b   : > { %1182 = vmatpush3.bf16.msra.mxu0 %v1133_v59 }
 0x11c   : > { %1206 = vmatpush3.bf16.msra.mxu1 %v1133_v59 }
 0x11e   : > { %1010 = vmatmul.mubr.f32.vlgmr.msra.gmra.mrb[4].mxu0 %v421_v62 }
 0x11f   : > { %1045 = vmatmul.mubr.f32.vlgmr.msra.gmra.mrb[4].mxu1 %v423_v63 }
 0x1d1   : > { %v508_v7 = vpop.f32.mrb[2].mxu0 }
 0x1d2   : > { %513 = vst.msk [vmem:[%s218_s17] sm:$0xff] %vm512_vm1, %v508_v7  ;;  %v941_v0 = vpop.f32.mrb[3].mxu0  ;;  %v580_v1 = vpop.f32.mrb[2].mxu1 }
 0x1d3   : > { %832 = vst.msk [vmem:[%s218_s17 + $0x8] sm:$0xff] %vm512_vm1, %v580_v1  ;;  %v976_v2 = vpop.f32.mrb[3].mxu1 }
 0x1f1   : > { %v652_v3 = vpop.f32.mrb[4].mxu0 }
 0x1f2   : > { %833 = vst.msk [vmem:[%s218_s17 + $0x10] sm:$0xff] %vm512_vm1, %v652_v3  ;;  %v1011_v4 = vpop.f32.mrb[5].mxu0  ;;  %v724_v5 = vpop.f32.mrb[4].mxu1 }
 0x1f3   : > { %834 = vst.msk [vmem:[%s218_s17 + $0x18] sm:$0xff] %vm512_vm1, %v724_v5  ;;  %v1046_v6 = vpop.f32.mrb[5].mxu1 }
 0x1f4 PF: > { %s13_s14 = sadd.s32 1, %s1256_s14   ;;  %s1604_s12 = smov %s1252_s13 }
 0x1f5   : > { %p10_p5 = scmp.ge.s32.totalorder %s13_s14, 4   ;;  %s1605_s13 = smov %s1607_s15 }
 0x1f7   :  { %12 = sbr.rel (!%p10_p5) target bundleno = 2 (0x2), region = 68 }

</bundles_post_ra>
